<compile_context>
chip_gen: v7x
topology: tpu7x:2x2x1
jax: 0.10.0
libtpu: 0.0.40
codegen_flags: <defaults>
</compile_context>

<pallas_src>
import jax
import jax.numpy as jnp
from jax.experimental import pallas as pl
from jax.experimental.pallas import tpu as pltpu


def _mlp_kernel(x_ref, w1_ref, w2_ref, p_ref, o_ref):
    # x_ref : [tb, f_in]   natural (batch-major) input tile
    # w1_ref: [f_out, f_in] PyTorch [out, in] layout
    # w2_ref: [f_out, f_out]
    # p_ref : [f_out, 3]   columns = (b1, alpha, b2)
    # o_ref : [f_out, tb]  y^T, lane-dense output (batch on the lane axis)
    x = x_ref[...]
    w1 = w1_ref[...]
    w2 = w2_ref[...]
    if x.dtype != w1.dtype:
        x = x.astype(w1.dtype)

    p = p_ref[...]
    b1 = p[:, 0:1]      # [f_out, 1] -> broadcast along the batch/lane axis
    alpha = p[:, 1:2]
    b2 = p[:, 2:3]

    # h^T = W1 @ x^T : contract the f_in axis of both operands (NT matmul),
    # result [f_out, tb] with the batch on the 128-lane axis.
    h = jax.lax.dot_general(
        w1, x, (((1,), (1,)), ((), ())), preferred_element_type=jnp.float32
    ) + b1
    # PReLU (per-output-channel alpha, broadcast along lanes)
    h = jnp.where(h >= 0.0, h, alpha * h)
    # z^T = W2 @ h^T : [f_out, f_out] @ [f_out, tb] -> [f_out, tb]
    z = jnp.dot(w2, h, preferred_element_type=jnp.float32) + b2
    # Sigmoid, lane-dense (unmasked) store
    o_ref[...] = jax.nn.sigmoid(z).astype(o_ref.dtype)


def _round_up(x, m):
    return ((x + m - 1) // m) * m


def _pick_batch_tile(B, tb_max=8192):
    """Lane-dense batch tile (multiple of 128), no rounding of B up to the
    tile.  Prefer >= 2 (balanced) grid steps so both v7x TensorCores get work.
    tb_max=8192 is the v6e sweet spot and well within every generation's
    scoped-VMEM limit (~3 MiB double-buffered); v7x callers can pass 16384,
    v5e callers 4096."""
    b128 = _round_up(max(B, 1), 128)
    tb = min(tb_max, b128)
    steps = pl.cdiv(b128, tb)
    if steps < 2 and b128 >= 256:
        steps = 2
    # Re-balance so the ragged last step isn't tiny.
    tb = _round_up(pl.cdiv(b128, steps), 128)
    return tb


def neural_network_ais_forward(x, w1, b1, alpha, w2, b2, *, tb_max=8192):
    """x: [B, F_in]; w1: [F_out, F_in]; w2: [F_out, F_out];
    b1, b2: [F_out]; alpha: [F_out] or shared scalar/(1,).
    Returns y: [B, F_out] float32."""
    B, f_in = x.shape
    f_out = w1.shape[0]

    # Fold the three per-channel vectors into one tiny operand: [F_out, 3].
    # broadcast_to covers both per-channel and PyTorch's shared-alpha PReLU.
    alpha_v = jnp.broadcast_to(jnp.ravel(jnp.asarray(alpha)), (f_out,))
    params = jnp.stack(
        [jnp.ravel(b1), alpha_v, jnp.ravel(b2)], axis=1
    ).astype(jnp.float32)

    tb = _pick_batch_tile(B, tb_max)
    grid = (pl.cdiv(B, tb),)

    yT = pl.pallas_call(
        _mlp_kernel,
        out_shape=jax.ShapeDtypeStruct((f_out, B), jnp.float32),
        grid_spec=pltpu.PrefetchScalarGridSpec(
            num_scalar_prefetch=0,
            grid=grid,
            in_specs=[
                pl.BlockSpec((tb, f_in), lambda i: (i, 0)),       # x tile (natural)
                pl.BlockSpec((f_out, f_in), lambda i: (0, 0)),    # W1 (resident)
                pl.BlockSpec((f_out, f_out), lambda i: (0, 0)),   # W2 (resident)
                pl.BlockSpec((f_out, 3), lambda i: (0, 0)),       # (b1|alpha|b2)
            ],
            out_specs=pl.BlockSpec((f_out, tb), lambda i: (0, i)),  # lane-dense y^T
        ),
        compiler_params=pltpu.CompilerParams(
            dimension_semantics=("parallel",),
        ),
    )(x, w1, w2, params)

    # y = (y^T)^T; left to XLA so it can fuse into the consumer.  The kernel's
    # own HBM traffic is the minimal read-x + write-y^T.
    return yT.T


def _reference_forward(x, w1, b1, alpha, w2, b2):
    h = x @ w1.T + b1
    h = jnp.where(h >= 0.0, h, alpha * h)
    z = h @ w2.T + b2
    return jax.nn.sigmoid(z)


if __name__ == "__main__":
    # Small shapes consistent with the module:
    #   num_input_categories = 32, num_output_categories = 16, batch = 8
    num_input_categories = 32
    num_output_categories = 16
    batch = 8

    key = jax.random.PRNGKey(0)
    kx, kw1, kb1, kw2, kb2 = jax.random.split(key, 5)

    x = jax.random.normal(kx, (batch, num_input_categories), dtype=jnp.float32)

    # Deterministic parameter init (PyTorch-like uniform fan-in scaling).
    bound1 = 1.0 / jnp.sqrt(num_input_categories)
    w1 = jax.random.uniform(kw1, (num_output_categories, num_input_categories),
                            minval=-bound1, maxval=bound1, dtype=jnp.float32)
    b1 = jax.random.uniform(kb1, (num_output_categories,),
                            minval=-bound1, maxval=bound1, dtype=jnp.float32)

    bound2 = 1.0 / jnp.sqrt(num_output_categories)
    w2 = jax.random.uniform(kw2, (num_output_categories, num_output_categories),
                            minval=-bound2, maxval=bound2, dtype=jnp.float32)
    b2 = jax.random.uniform(kb2, (num_output_categories,),
                            minval=-bound2, maxval=bound2, dtype=jnp.float32)

    # PyTorch PReLU default init: alpha = 0.25 (per channel here).
    alpha = jnp.full((num_output_categories,), 0.25, dtype=jnp.float32)

    y = neural_network_ais_forward(x, w1, b1, alpha, w2, b2)
    y = jax.block_until_ready(y)

    y_ref = _reference_forward(x, w1, b1, alpha, w2, b2)
    assert y.shape == (batch, num_output_categories)
    assert jnp.allclose(y, y_ref, atol=1e-5, rtol=1e-5), "mismatch vs reference"

    print("KERNEL_OK")
</pallas_src>

<mosaic_0001>
module attributes {stable_mosaic.version = 11 : i64} {
  func.func @_mlp_kernel(%arg0: i32, %arg1: memref<128x32xf32, #tpu.memory_space<vmem>>, %arg2: memref<16x32xf32, #tpu.memory_space<vmem>>, %arg3: memref<16x16xf32, #tpu.memory_space<vmem>>, %arg4: memref<16x3xf32, #tpu.memory_space<vmem>>, %arg5: memref<16x128xf32, #tpu.memory_space<vmem>>) attributes {dimension_semantics = [#tpu.dimension_semantics<parallel>], iteration_bounds = array<i64: 1>, scalar_prefetch = 0 : i64, scratch_operands = 0 : i64, tpu.core_type = #tpu.core_type<tc>, window_params = [{transform_indices = @transform_0, window_bounds = array<i64: 128, 32>}, {pipeline_mode = #tpu.pipeline_mode<synchronous>, transform_indices = @transform_1, window_bounds = array<i64: 16, 32>}, {pipeline_mode = #tpu.pipeline_mode<synchronous>, transform_indices = @transform_2, window_bounds = array<i64: 16, 16>}, {pipeline_mode = #tpu.pipeline_mode<synchronous>, transform_indices = @transform_3, window_bounds = array<i64: 16, 3>}, {transform_indices = @transform_4, window_bounds = array<i64: 16, 128>}]} {
    %c0 = arith.constant 0 : index
    %c0_0 = arith.constant 0 : index
    %0 = vector.load %arg1[%c0, %c0_0] : memref<128x32xf32, #tpu.memory_space<vmem>>, vector<128x32xf32>
    %c0_1 = arith.constant 0 : index
    %c0_2 = arith.constant 0 : index
    %1 = vector.load %arg2[%c0_1, %c0_2] : memref<16x32xf32, #tpu.memory_space<vmem>>, vector<16x32xf32>
    %c0_3 = arith.constant 0 : index
    %c0_4 = arith.constant 0 : index
    %2 = vector.load %arg3[%c0_3, %c0_4] : memref<16x16xf32, #tpu.memory_space<vmem>>, vector<16x16xf32>
    %c0_5 = arith.constant 0 : index
    %c0_6 = arith.constant 0 : index
    %3 = vector.load %arg4[%c0_5, %c0_6] : memref<16x3xf32, #tpu.memory_space<vmem>>, vector<16x3xf32>
    %4 = vector.extract_strided_slice %3 {offsets = [0, 0], sizes = [16, 1], strides = [1, 1]} : vector<16x3xf32> to vector<16x1xf32>
    %5 = vector.extract_strided_slice %3 {offsets = [0, 1], sizes = [16, 1], strides = [1, 1]} : vector<16x3xf32> to vector<16x1xf32>
    %6 = vector.extract_strided_slice %3 {offsets = [0, 2], sizes = [16, 1], strides = [1, 1]} : vector<16x3xf32> to vector<16x1xf32>
    %cst = arith.constant dense<0.000000e+00> : vector<16x128xf32>
    %7 = tpu.matmul %1, %0, %cst {dimension_numbers = #tpu.dot_dimension_numbers<[1], [1], [0], [0], [0, 0, 1, 0], [], []>} : vector<16x32xf32>, vector<128x32xf32>, vector<16x128xf32> -> vector<16x128xf32>
    %8 = vector.broadcast %4 : vector<16x1xf32> to vector<16x128xf32>
    %9 = arith.addf %7, %8 : vector<16x128xf32>
    %cst_7 = arith.constant 0.000000e+00 : f32
    %10 = vector.broadcast %cst_7 : f32 to vector<16x128xf32>
    %11 = arith.cmpf oge, %9, %10 : vector<16x128xf32>
    %12 = vector.broadcast %5 : vector<16x1xf32> to vector<16x128xf32>
    %13 = arith.mulf %12, %9 : vector<16x128xf32>
    %14 = arith.select %11, %9, %13 : vector<16x128xi1>, vector<16x128xf32>
    %cst_8 = arith.constant dense<0.000000e+00> : vector<16x128xf32>
    %15 = tpu.matmul %2, %14, %cst_8 {dimension_numbers = #tpu.dot_dimension_numbers<[1], [0], [0], [1], [0, 0, 1, 1], [], []>} : vector<16x16xf32>, vector<16x128xf32>, vector<16x128xf32> -> vector<16x128xf32>
    %16 = vector.broadcast %6 : vector<16x1xf32> to vector<16x128xf32>
    %17 = arith.addf %15, %16 : vector<16x128xf32>
    %18 = arith.negf %17 : vector<16x128xf32>
    %19 = math.exp %18 : vector<16x128xf32>
    %cst_9 = arith.constant 1.000000e+00 : f32
    %20 = vector.broadcast %cst_9 : f32 to vector<16x128xf32>
    %21 = arith.addf %20, %19 : vector<16x128xf32>
    %22 = arith.divf %20, %21 : vector<16x128xf32>
    %c0_10 = arith.constant 0 : index
    %c0_11 = arith.constant 0 : index
    %23 = vector.load %arg5[%c0_10, %c0_11] : memref<16x128xf32, #tpu.memory_space<vmem>>, vector<16x128xf32>
    tpu.vector_store %arg5[%c0_10, %c0_11], %22 {strides = array<i32>} : memref<16x128xf32, #tpu.memory_space<vmem>>, vector<16x128xf32>,
    return
  }
  func.func @transform_0(%arg0: i32) -> (i32, i32) {
    %c0_i32 = arith.constant 0 : i32
    %c0_i32_0 = arith.constant 0 : i32
    return %arg0, %c0_i32 : i32, i32
  }
  func.func @transform_1(%arg0: i32) -> (i32, i32) {
    %c0_i32 = arith.constant 0 : i32
    %c0_i32_0 = arith.constant 0 : i32
    %c0_i32_1 = arith.constant 0 : i32
    return %c0_i32, %c0_i32_0 : i32, i32
  }
  func.func @transform_2(%arg0: i32) -> (i32, i32) {
    %c0_i32 = arith.constant 0 : i32
    %c0_i32_0 = arith.constant 0 : i32
    %c0_i32_1 = arith.constant 0 : i32
    return %c0_i32, %c0_i32_0 : i32, i32
  }
  func.func @transform_3(%arg0: i32) -> (i32, i32) {
    %c0_i32 = arith.constant 0 : i32
    %c0_i32_0 = arith.constant 0 : i32
    %c0_i32_1 = arith.constant 0 : i32
    return %c0_i32, %c0_i32_0 : i32, i32
  }
  func.func @transform_4(%arg0: i32) -> (i32, i32) {
    %c0_i32 = arith.constant 0 : i32
    %c0_i32_0 = arith.constant 0 : i32
    return %c0_i32, %arg0 : i32, i32
  }
}

</mosaic_0001>

<bundles_post_ra>
// kernel: tpu_custom_call.1
= control target key start
LH: loop header
LB: loop body
LE: loop exit
PB: predicated region body
PF: predicated region fallthrough
CT: control target
= control target key end

     0   :  { %9 = vsyncpa [#allocation3], 0  ;;  %s652_s0 = inlined_call_operand.hbm [shape: f32[8,32], index: 0, kind: input, shape index: {}]   ;;  %s653_s1 = inlined_call_operand.vmem [shape: f32[16,32], index: 1, kind: input, shape index: {}]   ;;  %s654_s2 = inlined_call_operand.hbm [shape: f32[16,16], index: 2, kind: input, shape index: {}]   ;;  %s655_s3 = inlined_call_operand.vmem [shape: f32[16,3], index: 3, kind: input, shape index: {}]   ;;  %s656_s4 = inlined_call_operand.vmem [shape: f32[16,8], index: 4, kind: output, shape index: {}]  }
   0x1   :  { %10 = vsyncpa [#allocation5], 0 }
   0x2   :  { %15 = vsyncadd [#allocation3], 1920  ;;  %s536_s15 = smov [#allocation2]   ;;  %s488_s19 = scalar_lea.hbm %s652_s0, 128 }
   0x3   :  { %s16_s16 = sshll.u32 %s536_s15, 4  ;;  %p489_p0 = scmp.ne.s32.totalorder %s652_s0, %s488_s19  ;;  %s17_s16 = int_to_ptr.vmem [resolvable:$true] %s16_s16 }
   0x4   :  { %p492_p1 = scmp.lt.u32.totalorder %s488_s19, %s652_s0 }
   0x6   :  { %p494_p2 = pnand %p492_p1, %p489_p0 }
   0x8   :  { %497 = shalt.err (!%p494_p2)
}
   0x9   :  { %s498_s24 = scalar_lea.vmem %s17_s16, 128  ;;  %s502_s25 = scalar_lea.vmem %s17_s16, 2048 }
   0xa   :  { %p499_p3 = scmp.ne.s32.totalorder %s17_s16, %s498_s24  ;;  %p503_p4 = scmp.lt.s32.totalorder %s17_s16, %s17_s16 }
   0xb   :  { %p504_p5 = scmp.lt.s32.totalorder %s502_s25, %s498_s24 }
   0xd   :  { %p505_p6 = por %p504_p5, %p503_p4 }
   0xf   :  { %p506_p7 = pnand %p505_p6, %p499_p3 }
  0x11   :  { %509 = shalt.err (!%p506_p7)
}
  0x12   :  { %s537_s26 = smov 128   ;;  %s538_s27 = smov 8  }
  0x13   :  { %22 = dma.hbm_to_vmem [thread:$0]  %s652_s0, 128, %s17_s16, [#allocation3], %s537_s26, %s537_s26, %s538_s27  }
  0x14   :  { %s539_s30 = smov [#allocation4]   ;;  %s510_s8 = scalar_lea.hbm %s654_s2, 256 }
  0x15   :  { %s30_s5 = sshll.u32 %s539_s30, 4  ;;  %p511_p8 = scmp.ne.s32.totalorder %s654_s2, %s510_s8  ;;  %s31_s5 = int_to_ptr.vmem [resolvable:$true] %s30_s5 }
  0x16   :  { %p514_p9 = scmp.lt.u32.totalorder %s510_s8, %s654_s2 }
  0x18   :  { %p516_p10 = pnand %p514_p9, %p511_p8 }
  0x1a   :  { %519 = shalt.err (!%p516_p10)
}
  0x1b   :  { %s520_s13 = scalar_lea.vmem %s31_s5, 256  ;;  %p525_p12 = scmp.lt.s32.totalorder %s31_s5, %s31_s5 }
  0x1c   :  { %p521_p11 = scmp.ne.s32.totalorder %s31_s5, %s520_s13  ;;  %p526_p13 = scmp.lt.s32.totalorder %s520_s13, %s520_s13 }
  0x1e   :  { %p527_p0 = por %p526_p13, %p525_p12 }
  0x20   :  { %p528_p1 = pnand %p527_p0, %p521_p11 }
  0x22   :  { %531 = shalt.err (!%p528_p1)
}
  0x23   :  { %36 = dma.hbm_to_vmem [thread:$0]  %s654_s2, 256, %s31_s5, [#allocation5], %s537_s26, %s537_s26, %s538_s27  }
  0x24   :  { %532 = dma.done.wait [#allocation3], 2048  }
  0x25   :  { %533 = vsyncadd [#allocation3], 4294965248 }
  0x26   :  { %534 = dma.done.wait [#allocation5], 256  }
  0x27   :  { %535 = vsyncadd [#allocation5], 4294967040  ;;  %v540_v0 = vmov 0   ;;  %v541_v1 = vmov 1   ;;  %vm77_vm0 = vcmask 261120   ;;  %v45_v3 = vld [vmem:[#allocation2] sm:$0xff] }
  0x28   :  { %476 = vset.pattern.permute.xlu0 %v540_v0  ;;  %477 = vset.pattern.permute.xlu1 %v541_v1  ;;  %vm594_vm1 = vmpackc.low %vm77_vm0, %vm77_vm0  ;;  %v46_v4 = vld [vmem:[#allocation2 + $0x8] sm:$0xff]  ;;  %v47_v5 = vld [vmem:[#allocation2 + $0x10] sm:$0xff]  ;;  %vm229_vm2 = vcmask 130048   ;;  %v542_v32 = vmov 2  }
  0x29   :  { %v417_v6 = vpack.c.bf16 %v46_v4, %v45_v3  ;;  %v48_v7 = vld [vmem:[#allocation2 + $0x18] sm:$0xff]  ;;  %v61_v9 = vld [vmem:[%s653_s1] sm:$0xff]  ;;  %v50_v11 = vld [vmem:[#allocation2 + $0x28] sm:$0xff] }
  0x2a   :  { %v423_v8 = vpack.c.bf16 %v48_v7, %v47_v5  ;;  %v49_v10 = vld [vmem:[#allocation2 + $0x20] sm:$0xff]  ;;  %407 = vmatprep.mubr.msk.f32.mxu0 %vm77_vm0, %v61_v9  ;;  %v66_v13 = vld [vmem:[%s655_s3 + $0x8] sm:$0xff]  ;;  %v51_v15 = vld [vmem:[#allocation2 + $0x30] sm:$0xff] }
  0x2b   :  { %419 = vmatprep.subr.msk.bf16.mxu0 %vm594_vm1, %v417_v6  ;;  %v65_v12 = vld [vmem:[%s655_s3] sm:$0xff]  ;;  %v429_v14 = vpack.c.bf16 %v50_v11, %v49_v10  ;;  %v52_v16 = vld [vmem:[#allocation2 + $0x38] sm:$0xff]  ;;  %v54_v19 = vld [vmem:[#allocation2 + $0x48] sm:$0xff] }
  0x2c   :  { %422 = vmatpush3.bf16.xpose.msk.msra.mxu0 %vm594_vm1, %v417_v6  ;;  %69 = vperm.xlu0 %476, %v65_v12   ;;  %v435_v17 = vpack.c.bf16 %v52_v16, %v51_v15  ;;  %v53_v18 = vld [vmem:[#allocation2 + $0x40] sm:$0xff]  ;;  %v55_v21 = vld [vmem:[#allocation2 + $0x50] sm:$0xff]  ;;  %v56_v22 = vld [vmem:[#allocation2 + $0x58] sm:$0xff] }
  0x2d   :  { %425 = vmatprep.subr.msk.bf16.mxu0 %vm594_vm1, %v423_v8  ;;  %210 = vperm.xlu1 %477, %v65_v12   ;;  %v441_v20 = vpack.c.bf16 %v54_v19, %v53_v18  ;;  %v447_v23 = vpack.c.bf16 %v56_v22, %v55_v21  ;;  %v57_v24 = vld [vmem:[#allocation2 + $0x60] sm:$0xff]  ;;  %v58_v25 = vld [vmem:[#allocation2 + $0x68] sm:$0xff]  ;;  %v59_v27 = vld [vmem:[#allocation2 + $0x70] sm:$0xff] }
  0x2e   :  { %v453_v26 = vpack.c.bf16 %v58_v25, %v57_v24  ;;  %v60_v28 = vld [vmem:[#allocation2 + $0x78] sm:$0xff]  ;;  %v62_v30 = vld [vmem:[%s653_s1 + $0x8] sm:$0xff]  ;;  %v63_v31 = vld [vmem:[#allocation4] sm:$0xff] }
  0x2f   :  { %v459_v29 = vpack.c.bf16 %v60_v28, %v59_v27  ;;  %414 = vmatprep.mubr.msk.f32.mxu1 %vm229_vm2, %v63_v31  ;;  %v64_v46 = vld [vmem:[#allocation4 + $0x8] sm:$0xff] }
  0x30   :  { %74 = vperm.xlu0 %476, %v66_v13  }
  0x31   :  { %214 = vperm.xlu1 %477, %v66_v13  }
  0x34   :  { %428 = vmatpush3.bf16.xpose.msk.msra.mxu0 %vm594_vm1, %v423_v8  ;;  %478 = vset.pattern.permute.xlu0 %v542_v32 }
  0x35   :  { %431 = vmatprep.subr.msk.bf16.mxu0 %vm594_vm1, %v429_v14  ;;  %479 = vset.pattern.permute.xlu1 %v542_v32 }
  0x36   :  { %226 = vperm.xlu1 %479, %v66_v13   ;;  %222 = vperm.xlu0 %478, %v65_v12  }
  0x3c   :  { %434 = vmatpush3.bf16.xpose.msk.msra.mxu0 %vm594_vm1, %v429_v14 }
  0x3d   :  { %437 = vmatprep.subr.msk.bf16.mxu0 %vm594_vm1, %v435_v17 }
  0x44   :  { %440 = vmatpush3.bf16.xpose.msk.msra.mxu0 %vm594_vm1, %v435_v17 }
  0x45   :  { %443 = vmatprep.subr.msk.bf16.mxu0 %vm594_vm1, %v441_v20 }
  0x4c   :  { %446 = vmatpush3.bf16.xpose.msk.msra.mxu0 %vm594_vm1, %v441_v20 }
  0x4d   :  { %449 = vmatprep.subr.msk.bf16.mxu0 %vm594_vm1, %v447_v23 }
  0x54   :  { %452 = vmatpush3.bf16.xpose.msk.msra.mxu0 %vm594_vm1, %v447_v23 }
  0x55   :  { %455 = vmatprep.subr.msk.bf16.mxu0 %vm594_vm1, %v453_v26 }
  0x5c   :  { %458 = vmatpush3.bf16.xpose.msk.msra.mxu0 %vm594_vm1, %v453_v26 }
  0x5d   :  { %461 = vmatprep.subr.msk.bf16.mxu0 %vm594_vm1, %v459_v29 }
  0x64   :  { %464 = vmatpush3.bf16.xpose.msk.msra.mxu0 %vm594_vm1, %v459_v29 }
  0x6b   :  { %408 = vmatmul.mubr.msk.f32.vlgmr.msra.gmra.mrb[0].mxu0 %vm77_vm0, %v62_v30 }
  0xab   :  { %v70_v33 = vpop.permute.xlu0 %69 }
  0xac   :  { %v211_v34 = vpop.permute.xlu1 %210 }
  0xaf   :  { %v75_v35 = vpop.permute.xlu0 %74 }
  0xb0   :  { %v215_v39 = vpop.permute.xlu1 %214 }
  0xb5   :  { %v227_v47 = vpop.permute.xlu1 %226  ;;  %v223_v48 = vpop.permute.xlu0 %222 }
 0x13e   :  { %v409_v36 = vpop.f32.mrb[0].mxu0 }
 0x13f   :  { %v204_v37 = vadd.f32 %v409_v36, %v75_v35  ;;  %v198_v38 = vpop.f32.mrb[1].mxu0 }
 0x140   :  { %v199_v40 = vadd.f32 %v198_v38, %v70_v33 }
 0x141   :  { %v218_v41 = vmul.f32 %v215_v39, %v204_v37  ;;  %vm208_vm3 = vcmp.ge.f32.partialorder %v204_v37, 0.0 }
 0x142   :  { %v217_v42 = vmul.f32 %v211_v34, %v199_v40  ;;  %vm207_vm4 = vcmp.ge.f32.partialorder %v199_v40, 0.0 }
 0x143   :  { %v220_v43 = vsel %vm208_vm3, %v204_v37, %v218_v41 }
 0x144   :  { %v219_v44 = vsel %vm207_vm4, %v199_v40, %v217_v42 }
 0x145   :  { %v465_v45 = vpack.c.bf16 %v220_v43, %v219_v44 }
 0x147   :  { %466 = vmatprep.subr.bf16.mxu1 %v465_v45 }
 0x148   :  { %468 = vmatpush3.bf16.msra.mxu1 %v465_v45 }
 0x14b   :  { %415 = vmatmul.mubr.msk.f32.vlgmr.msra.gmra.mrb[0].mxu1 %vm229_vm2, %v64_v46 }
 0x21e   :  { %v416_v49 = vpop.f32.mrb[0].mxu1 }
 0x21f   :  { %v308_v50 = vadd.f32 %v416_v49, %v227_v47  ;;  %v302_v51 = vpop.f32.mrb[1].mxu1 }
 0x220   :  { %v303_v52 = vadd.f32 %v302_v51, %v223_v48 }
 0x221   :  { %v352_v53 = vmul.f32 -1.442695, %v308_v50 }
 0x222   :  { %v351_v54 = vmul.f32 -1.442695, %v303_v52 }
 0x223   :  { %480 = vpow2.f32 %v352_v53 }
 0x224   :  { %482 = vpow2.f32 %v351_v54 }
 0x22d   :  { %v481_v55 = vpop.eup %480 }
 0x22e   :  { %v483_v56 = vpop.eup %482  ;;  %v318_v57 = vadd.f32 1.0, %v481_v55 }
 0x22f   :  { %v317_v58 = vadd.f32 1.0, %v483_v56 }
 0x230   :  { %484 = vrcp.f32 %v318_v57 }
 0x231   :  { %486 = vrcp.f32 %v317_v58 }
 0x23a   :  { %v485_v59 = vpop.eup %484 }
 0x23b   :  { %v487_v60 = vpop.eup %486  ;;  %324 = vst [vmem:[%s656_s4 + $0x8] sm:$0xff] %v485_v59 }
 0x23c   :  { %323 = vst [vmem:[%s656_s4] sm:$0xff] %v487_v60 }
 0x23d   :  { %329 = vsyncpa [#allocation3], 1 }
 0x23e   :  { %330 = vsyncpa [#allocation5], 1 }

</bundles_post_ra>
